<compile_context>
chip_gen: v7x
topology: tpu7x:2x2x1
jax: 0.10.0
libtpu: 0.0.40
codegen_flags: <defaults>
</compile_context>

<pallas_src>
import jax
import jax.numpy as jnp
from jax.experimental import pallas as pl
from jax.experimental.pallas import tpu as pltpu


def _round_up(x: int, m: int) -> int:
    return ((x + m - 1) // m) * m


def _cdiv(a: int, b: int) -> int:
    return -(-a // b)


def _itemsize(dtype) -> int:
    return jnp.dtype(dtype).itemsize


def _default_vmem_limit_bytes() -> int:
    """Per-generation scoped-VMEM budget (48 MiB on v7x, 96 MiB on v5e/v6e)."""
    cap = 64 * 1024 * 1024
    try:
        info = pltpu.get_tpu_info()
        cap = int(getattr(info, "vmem_capacity_bytes", cap) or cap)
    except Exception:
        pass
    return min(96 * 1024 * 1024, (cap * 3) // 4)


# --------------------------------------------------------------------------- #
# Kernel
# --------------------------------------------------------------------------- #
def classifier_kernel(a_ref, b_ref, wg1_ref, wg2_ref, bg_ref, wc_ref, bc_ref,
                      o_ref):
    a = a_ref[...]
    b = b_ref[...]

    # Gate pre-activation: two dots against the resident gate weights.
    # (No concat: MXU push count is the same either way; this avoids the
    # (tb, 2E) VMEM temp and its relayout.)
    z = (jnp.dot(a, wg1_ref[...], preferred_element_type=jnp.float32)
         + jnp.dot(b, wg2_ref[...], preferred_element_type=jnp.float32)
         + bg_ref[...])
    g = jax.nn.sigmoid(z)

    # h = g*a + (1-g)*b, rewritten as b + g*(a-b); gate math in f32.
    af = a.astype(jnp.float32)
    bf = b.astype(jnp.float32)
    h = bf + g * (af - bf)

    # Classifier head at the weight dtype's MXU rate, f32 accumulation.
    # Cpad is a 128-multiple, so the store below is lane-dense (full vst).
    y = (jnp.dot(h.astype(wc_ref.dtype), wc_ref[...],
                 preferred_element_type=jnp.float32)
         + bc_ref[...])
    o_ref[...] = y.astype(o_ref.dtype)


# --------------------------------------------------------------------------- #
# Parameter prep (hoist out of the per-call forward path; run once at load)
# --------------------------------------------------------------------------- #
def prepare_classifier_params(wg1, wg2, bg, wc, bc, *, weight_dtype=None):
    """Pad / reshape parameters once. weight_dtype=jnp.bfloat16 enables the
    cheap bf16 MXU path (accumulation stays f32 in-kernel)."""
    embed_dim = wg1.shape[0]
    class_num = wc.shape[1]
    c_pad = _round_up(max(class_num, 128), 128)

    if weight_dtype is not None:
        wg1 = wg1.astype(weight_dtype)
        wg2 = wg2.astype(weight_dtype)
        wc = wc.astype(weight_dtype)

    wc_p = jnp.pad(wc, ((0, 0), (0, c_pad - class_num)))
    bg2 = bg.reshape(1, embed_dim).astype(jnp.float32)
    bc_p = jnp.pad(bc.reshape(1, class_num).astype(jnp.float32),
                   ((0, 0), (0, c_pad - class_num)))

    return {
        "wg1": wg1, "wg2": wg2, "bg": bg2, "wc": wc_p, "bc": bc_p,
        "class_num": class_num, "embed_dim": embed_dim, "c_pad": c_pad,
    }


# --------------------------------------------------------------------------- #
# Forward
# --------------------------------------------------------------------------- #
def _derive_batch_tile(embed_dim, c_pad, act_bytes, w_bytes, out_bytes,
                       vmem_limit):
    """Largest batch tile (multiple of 8, <= 2048) fitting the VMEM budget."""
    resident = (2 * embed_dim * embed_dim * w_bytes          # Wg1 + Wg2
                + embed_dim * c_pad * w_bytes                # Wc
                + (embed_dim + c_pad) * 4)                   # f32 biases
    # Per batch-row: 2 activation inputs x 2 pipeline buffers, 2 output
    # buffers, plus a few f32 intermediates (z / g / h / y).
    per_row = (2 * 2 * embed_dim * act_bytes
               + 2 * c_pad * out_bytes
               + 4 * embed_dim * 4
               + c_pad * 4)
    avail = int(vmem_limit * 0.85) - resident
    tb = (avail // max(per_row, 1)) // 8 * 8
    return int(max(8, min(2048, tb)))


def classifier_forward(a, b, params, *, block_batch=None, out_dtype=None,
                       vmem_limit_bytes=None):
    """Gate(a, b) followed by Linear(embed_dim, class_num)."""
    batch, embed_dim = a.shape
    assert params["embed_dim"] == embed_dim
    class_num = params["class_num"]
    c_pad = params["c_pad"]
    wg1, wg2, bg = params["wg1"], params["wg2"], params["bg"]
    wc_p, bc_p = params["wc"], params["bc"]

    if out_dtype is None:
        out_dtype = a.dtype
    if vmem_limit_bytes is None:
        vmem_limit_bytes = _default_vmem_limit_bytes()

    # --- batch tiling: budget-driven, balanced, >=2 steps for v7x megacore ---
    if block_batch is None:
        tb_budget = _derive_batch_tile(
            embed_dim, c_pad,
            act_bytes=_itemsize(a.dtype),
            w_bytes=_itemsize(wc_p.dtype),
            out_bytes=_itemsize(out_dtype),
            vmem_limit=vmem_limit_bytes)
        num_tiles = _cdiv(batch, tb_budget)
        if batch > 8 and num_tiles < 2:
            num_tiles = 2   # let the parallel batch axis use both v7x TCs
    else:
        num_tiles = _cdiv(batch, max(8, block_batch))
    tb = _round_up(_cdiv(batch, num_tiles), 8)
    b_pad = _round_up(batch, tb)

    if b_pad != batch:
        a = jnp.pad(a, ((0, b_pad - batch), (0, 0)))
        b = jnp.pad(b, ((0, b_pad - batch), (0, 0)))

    grid = (b_pad // tb,)
    act_spec = pl.BlockSpec((tb, embed_dim), lambda i: (i, 0))
    out_spec = pl.BlockSpec((tb, c_pad), lambda i: (i, 0))

    def build(single_buffer_weights):
        if single_buffer_weights:
            # Constant index_map -> never re-DMA'd; single-buffer to halve the
            # resident weight VMEM footprint.
            def resident(shape):
                return pl.BlockSpec(shape, lambda i, _n=len(shape): (0,) * _n,
                                    pipeline_mode=pl.Buffered(1))
        else:
            def resident(shape):
                return pl.BlockSpec(shape, lambda i, _n=len(shape): (0,) * _n)

        return pl.pallas_call(
            classifier_kernel,
            out_shape=jax.ShapeDtypeStruct((b_pad, c_pad), out_dtype),
            grid=grid,
            in_specs=[
                act_spec,                  # a   (tb, E)
                act_spec,                  # b   (tb, E)
                resident(wg1.shape),       # Wg1 (E, E)
                resident(wg2.shape),       # Wg2 (E, E)
                resident(bg.shape),        # bg  (1, E)
                resident(wc_p.shape),      # Wc  (E, Cpad)
                resident(bc_p.shape),      # bc  (1, Cpad)
            ],
            out_specs=out_spec,
            compiler_params=pltpu.CompilerParams(
                dimension_semantics=("parallel",),   # megacore-shardable batch
                vmem_limit_bytes=int(vmem_limit_bytes),
            ),
        )

    try:
        out = build(True)(a, b, wg1, wg2, bg, wc_p, bc_p)
    except Exception:
        # Fallback if this JAX build rejects Buffered(1) on pipelined inputs.
        out = build(False)(a, b, wg1, wg2, bg, wc_p, bc_p)

    return out[:batch, :class_num]


# --------------------------------------------------------------------------- #
# Pure-JAX reference
# --------------------------------------------------------------------------- #
def reference_forward(a, b, wg1, wg2, bg, wc, bc):
    g = jax.nn.sigmoid(a @ wg1 + b @ wg2 + bg)
    h = g * a + (1.0 - g) * b
    return h @ wc + bc


if __name__ == "__main__":
    batch, embed_dim, class_num = 8, 32, 16

    key = jax.random.PRNGKey(0)
    k_a, k_b, k_wg1, k_wg2, k_bg, k_wc, k_bc = jax.random.split(key, 7)

    # Two input embeddings fed to the Gate (Classifier.forward(*args)).
    a = jax.random.normal(k_a, (batch, embed_dim), jnp.float32)
    b = jax.random.normal(k_b, (batch, embed_dim), jnp.float32)

    # Deterministic synthetic parameters (stored as [in, out]).
    scale_g = 1.0 / jnp.sqrt(jnp.float32(2 * embed_dim))
    scale_c = 1.0 / jnp.sqrt(jnp.float32(embed_dim))
    wg1 = jax.random.normal(k_wg1, (embed_dim, embed_dim), jnp.float32) * scale_g
    wg2 = jax.random.normal(k_wg2, (embed_dim, embed_dim), jnp.float32) * scale_g
    bg = jax.random.normal(k_bg, (1, embed_dim), jnp.float32) * scale_g
    wc = jax.random.normal(k_wc, (embed_dim, class_num), jnp.float32) * scale_c
    bc = jax.random.normal(k_bc, (1, class_num), jnp.float32) * scale_c

    # Parameter prep is done ONCE (hoisted out of the forward path).
    params = prepare_classifier_params(wg1, wg2, bg, wc, bc)

    out = classifier_forward(a, b, params)
    out = jax.block_until_ready(out)

    ref = reference_forward(a, b, wg1, wg2, bg, wc, bc)
    assert out.shape == (batch, class_num)
    assert jnp.allclose(out, ref, atol=1e-4, rtol=1e-4), "mismatch vs reference"

    print("KERNEL_OK")
</pallas_src>

<mosaic_0001>
module attributes {stable_mosaic.version = 11 : i64} {
  func.func @classifier_kernel(%arg0: i32, %arg1: memref<8x32xf32, #tpu.memory_space<vmem>>, %arg2: memref<8x32xf32, #tpu.memory_space<vmem>>, %arg3: memref<32x32xf32, #tpu.memory_space<vmem>>, %arg4: memref<32x32xf32, #tpu.memory_space<vmem>>, %arg5: memref<1x32xf32, #tpu.memory_space<vmem>>, %arg6: memref<32x128xf32, #tpu.memory_space<vmem>>, %arg7: memref<1x128xf32, #tpu.memory_space<vmem>>, %arg8: memref<8x128xf32, #tpu.memory_space<vmem>>) attributes {dimension_semantics = [#tpu.dimension_semantics<parallel>], iteration_bounds = array<i64: 1>, scalar_prefetch = 0 : i64, scratch_operands = 0 : i64, tpu.core_type = #tpu.core_type<tc>, window_params = [{transform_indices = @transform_0, window_bounds = array<i64: 8, 32>}, {transform_indices = @transform_1, window_bounds = array<i64: 8, 32>}, {pipeline_mode = #tpu.pipeline_mode<synchronous>, transform_indices = @transform_2, window_bounds = array<i64: 32, 32>}, {pipeline_mode = #tpu.pipeline_mode<synchronous>, transform_indices = @transform_3, window_bounds = array<i64: 32, 32>}, {pipeline_mode = #tpu.pipeline_mode<synchronous>, transform_indices = @transform_4, window_bounds = array<i64: 1, 32>}, {pipeline_mode = #tpu.pipeline_mode<synchronous>, transform_indices = @transform_5, window_bounds = array<i64: 32, 128>}, {pipeline_mode = #tpu.pipeline_mode<synchronous>, transform_indices = @transform_6, window_bounds = array<i64: 1, 128>}, {transform_indices = @transform_7, window_bounds = array<i64: 8, 128>}]} {
    %c0 = arith.constant 0 : index
    %c0_0 = arith.constant 0 : index
    %0 = vector.load %arg1[%c0, %c0_0] : memref<8x32xf32, #tpu.memory_space<vmem>>, vector<8x32xf32>
    %c0_1 = arith.constant 0 : index
    %c0_2 = arith.constant 0 : index
    %1 = vector.load %arg2[%c0_1, %c0_2] : memref<8x32xf32, #tpu.memory_space<vmem>>, vector<8x32xf32>
    %c0_3 = arith.constant 0 : index
    %c0_4 = arith.constant 0 : index
    %2 = vector.load %arg3[%c0_3, %c0_4] : memref<32x32xf32, #tpu.memory_space<vmem>>, vector<32x32xf32>
    %cst = arith.constant dense<0.000000e+00> : vector<8x32xf32>
    %3 = tpu.matmul %0, %2, %cst {dimension_numbers = #tpu.dot_dimension_numbers<[1], [0], [0], [1], [0, 0, 1, 1], [], []>} : vector<8x32xf32>, vector<32x32xf32>, vector<8x32xf32> -> vector<8x32xf32>
    %c0_5 = arith.constant 0 : index
    %c0_6 = arith.constant 0 : index
    %4 = vector.load %arg4[%c0_5, %c0_6] : memref<32x32xf32, #tpu.memory_space<vmem>>, vector<32x32xf32>
    %cst_7 = arith.constant dense<0.000000e+00> : vector<8x32xf32>
    %5 = tpu.matmul %1, %4, %cst_7 {dimension_numbers = #tpu.dot_dimension_numbers<[1], [0], [0], [1], [0, 0, 1, 1], [], []>} : vector<8x32xf32>, vector<32x32xf32>, vector<8x32xf32> -> vector<8x32xf32>
    %6 = arith.addf %3, %5 : vector<8x32xf32>
    %c0_8 = arith.constant 0 : index
    %c0_9 = arith.constant 0 : index
    %7 = vector.load %arg5[%c0_8, %c0_9] : memref<1x32xf32, #tpu.memory_space<vmem>>, vector<1x32xf32>
    %8 = vector.broadcast %7 : vector<1x32xf32> to vector<8x32xf32>
    %9 = arith.addf %6, %8 : vector<8x32xf32>
    %10 = arith.negf %9 : vector<8x32xf32>
    %11 = math.exp %10 : vector<8x32xf32>
    %cst_10 = arith.constant 1.000000e+00 : f32
    %12 = vector.broadcast %cst_10 : f32 to vector<8x32xf32>
    %13 = arith.addf %12, %11 : vector<8x32xf32>
    %14 = arith.divf %12, %13 : vector<8x32xf32>
    %15 = arith.subf %0, %1 : vector<8x32xf32>
    %16 = arith.mulf %14, %15 : vector<8x32xf32>
    %17 = arith.addf %1, %16 : vector<8x32xf32>
    %c0_11 = arith.constant 0 : index
    %c0_12 = arith.constant 0 : index
    %18 = vector.load %arg6[%c0_11, %c0_12] : memref<32x128xf32, #tpu.memory_space<vmem>>, vector<32x128xf32>
    %cst_13 = arith.constant dense<0.000000e+00> : vector<8x128xf32>
    %19 = tpu.matmul %17, %18, %cst_13 {dimension_numbers = #tpu.dot_dimension_numbers<[1], [0], [0], [1], [0, 0, 1, 1], [], []>} : vector<8x32xf32>, vector<32x128xf32>, vector<8x128xf32> -> vector<8x128xf32>
    %c0_14 = arith.constant 0 : index
    %c0_15 = arith.constant 0 : index
    %20 = vector.load %arg7[%c0_14, %c0_15] : memref<1x128xf32, #tpu.memory_space<vmem>>, vector<1x128xf32>
    %21 = vector.broadcast %20 : vector<1x128xf32> to vector<8x128xf32>
    %22 = arith.addf %19, %21 : vector<8x128xf32>
    %c0_16 = arith.constant 0 : index
    %c0_17 = arith.constant 0 : index
    %23 = vector.load %arg8[%c0_16, %c0_17] : memref<8x128xf32, #tpu.memory_space<vmem>>, vector<8x128xf32>
    tpu.vector_store %arg8[%c0_16, %c0_17], %22 {strides = array<i32>} : memref<8x128xf32, #tpu.memory_space<vmem>>, vector<8x128xf32>,
    return
  }
  func.func @transform_0(%arg0: i32) -> (i32, i32) {
    %c0_i32 = arith.constant 0 : i32
    %c0_i32_0 = arith.constant 0 : i32
    return %arg0, %c0_i32 : i32, i32
  }
  func.func @transform_1(%arg0: i32) -> (i32, i32) {
    %c0_i32 = arith.constant 0 : i32
    %c0_i32_0 = arith.constant 0 : i32
    return %arg0, %c0_i32 : i32, i32
  }
  func.func @transform_2(%arg0: i32) -> (i32, i32) {
    %c0_i32 = arith.constant 0 : i32
    %c0_i32_0 = arith.constant 0 : i32
    %c0_i32_1 = arith.constant 0 : i32
    return %c0_i32, %c0_i32_0 : i32, i32
  }
  func.func @transform_3(%arg0: i32) -> (i32, i32) {
    %c0_i32 = arith.constant 0 : i32
    %c0_i32_0 = arith.constant 0 : i32
    %c0_i32_1 = arith.constant 0 : i32
    return %c0_i32, %c0_i32_0 : i32, i32
  }
  func.func @transform_4(%arg0: i32) -> (i32, i32) {
    %c0_i32 = arith.constant 0 : i32
    %c0_i32_0 = arith.constant 0 : i32
    %c0_i32_1 = arith.constant 0 : i32
    return %c0_i32, %c0_i32_0 : i32, i32
  }
  func.func @transform_5(%arg0: i32) -> (i32, i32) {
    %c0_i32 = arith.constant 0 : i32
    %c0_i32_0 = arith.constant 0 : i32
    %c0_i32_1 = arith.constant 0 : i32
    return %c0_i32, %c0_i32_0 : i32, i32
  }
  func.func @transform_6(%arg0: i32) -> (i32, i32) {
    %c0_i32 = arith.constant 0 : i32
    %c0_i32_0 = arith.constant 0 : i32
    %c0_i32_1 = arith.constant 0 : i32
    return %c0_i32, %c0_i32_0 : i32, i32
  }
  func.func @transform_7(%arg0: i32) -> (i32, i32) {
    %c0_i32 = arith.constant 0 : i32
    %c0_i32_0 = arith.constant 0 : i32
    return %arg0, %c0_i32 : i32, i32
  }
}

module attributes {stable_mosaic.version = 11 : i64} {
  func.func @classifier_kernel(%arg0: i32, %arg1: memref<8x32xf32, #tpu.memory_space<vmem>>, %arg2: memref<8x32xf32, #tpu.memory_space<vmem>>, %arg3: memref<32x32xf32, #tpu.memory_space<vmem>>, %arg4: memref<32x32xf32, #tpu.memory_space<vmem>>, %arg5: memref<1x32xf32, #tpu.memory_space<vmem>>, %arg6: memref<32x128xf32, #tpu.memory_space<vmem>>, %arg7: memref<1x128xf32, #tpu.memory_space<vmem>>, %arg8: memref<8x128xf32, #tpu.memory_space<vmem>>) attributes {dimension_semantics = [#tpu.dimension_semantics<parallel>], iteration_bounds = array<i64: 1>, scalar_prefetch = 0 : i64, scratch_operands = 0 : i64, tpu.core_type = #tpu.core_type<tc>, window_params = [{transform_indices = @transform_0, window_bounds = array<i64: 8, 32>}, {transform_indices = @transform_1, window_bounds = array<i64: 8, 32>}, {pipeline_mode = #tpu.pipeline_mode<synchronous>, transform_indices = @transform_2, window_bounds = array<i64: 32, 32>}, {pipeline_mode = #tpu.pipeline_mode<synchronous>, transform_indices = @transform_3, window_bounds = array<i64: 32, 32>}, {pipeline_mode = #tpu.pipeline_mode<synchronous>, transform_indices = @transform_4, window_bounds = array<i64: 1, 32>}, {pipeline_mode = #tpu.pipeline_mode<synchronous>, transform_indices = @transform_5, window_bounds = array<i64: 32, 128>}, {pipeline_mode = #tpu.pipeline_mode<synchronous>, transform_indices = @transform_6, window_bounds = array<i64: 1, 128>}, {transform_indices = @transform_7, window_bounds = array<i64: 8, 128>}]} {
    %c0 = arith.constant 0 : index
    %c0_0 = arith.constant 0 : index
    %0 = vector.load %arg1[%c0, %c0_0] : memref<8x32xf32, #tpu.memory_space<vmem>>, vector<8x32xf32>
    %c0_1 = arith.constant 0 : index
    %c0_2 = arith.constant 0 : index
    %1 = vector.load %arg2[%c0_1, %c0_2] : memref<8x32xf32, #tpu.memory_space<vmem>>, vector<8x32xf32>
    %c0_3 = arith.constant 0 : index
    %c0_4 = arith.constant 0 : index
    %2 = vector.load %arg3[%c0_3, %c0_4] : memref<32x32xf32, #tpu.memory_space<vmem>>, vector<32x32xf32>
    %cst = arith.constant dense<0.000000e+00> : vector<8x32xf32>
    %3 = tpu.matmul %0, %2, %cst {dimension_numbers = #tpu.dot_dimension_numbers<[1], [0], [0], [1], [0, 0, 1, 1], [], []>} : vector<8x32xf32>, vector<32x32xf32>, vector<8x32xf32> -> vector<8x32xf32>
    %c0_5 = arith.constant 0 : index
    %c0_6 = arith.constant 0 : index
    %4 = vector.load %arg4[%c0_5, %c0_6] : memref<32x32xf32, #tpu.memory_space<vmem>>, vector<32x32xf32>
    %cst_7 = arith.constant dense<0.000000e+00> : vector<8x32xf32>
    %5 = tpu.matmul %1, %4, %cst_7 {dimension_numbers = #tpu.dot_dimension_numbers<[1], [0], [0], [1], [0, 0, 1, 1], [], []>} : vector<8x32xf32>, vector<32x32xf32>, vector<8x32xf32> -> vector<8x32xf32>
    %6 = arith.addf %3, %5 : vector<8x32xf32>
    %c0_8 = arith.constant 0 : index
    %c0_9 = arith.constant 0 : index
    %7 = vector.load %arg5[%c0_8, %c0_9] : memref<1x32xf32, #tpu.memory_space<vmem>>, vector<1x32xf32>
    %8 = vector.broadcast %7 : vector<1x32xf32> to vector<8x32xf32>
    %9 = arith.addf %6, %8 : vector<8x32xf32>
    %10 = arith.negf %9 : vector<8x32xf32>
    %11 = math.exp %10 : vector<8x32xf32>
    %cst_10 = arith.constant 1.000000e+00 : f32
    %12 = vector.broadcast %cst_10 : f32 to vector<8x32xf32>
    %13 = arith.addf %12, %11 : vector<8x32xf32>
    %14 = arith.divf %12, %13 : vector<8x32xf32>
    %15 = arith.subf %0, %1 : vector<8x32xf32>
    %16 = arith.mulf %14, %15 : vector<8x32xf32>
    %17 = arith.addf %1, %16 : vector<8x32xf32>
    %c0_11 = arith.constant 0 : index
    %c0_12 = arith.constant 0 : index
    %18 = vector.load %arg6[%c0_11, %c0_12] : memref<32x128xf32, #tpu.memory_space<vmem>>, vector<32x128xf32>
    %cst_13 = arith.constant dense<0.000000e+00> : vector<8x128xf32>
    %19 = tpu.matmul %17, %18, %cst_13 {dimension_numbers = #tpu.dot_dimension_numbers<[1], [0], [0], [1], [0, 0, 1, 1], [], []>} : vector<8x32xf32>, vector<32x128xf32>, vector<8x128xf32> -> vector<8x128xf32>
    %c0_14 = arith.constant 0 : index
    %c0_15 = arith.constant 0 : index
    %20 = vector.load %arg7[%c0_14, %c0_15] : memref<1x128xf32, #tpu.memory_space<vmem>>, vector<1x128xf32>
    %21 = vector.broadcast %20 : vector<1x128xf32> to vector<8x128xf32>
    %22 = arith.addf %19, %21 : vector<8x128xf32>
    %c0_16 = arith.constant 0 : index
    %c0_17 = arith.constant 0 : index
    %23 = vector.load %arg8[%c0_16, %c0_17] : memref<8x128xf32, #tpu.memory_space<vmem>>, vector<8x128xf32>
    tpu.vector_store %arg8[%c0_16, %c0_17], %22 {strides = array<i32>} : memref<8x128xf32, #tpu.memory_space<vmem>>, vector<8x128xf32>,
    return
  }
  func.func @transform_0(%arg0: i32) -> (i32, i32) {
    %c0_i32 = arith.constant 0 : i32
    %c0_i32_0 = arith.constant 0 : i32
    return %arg0, %c0_i32 : i32, i32
  }
  func.func @transform_1(%arg0: i32) -> (i32, i32) {
    %c0_i32 = arith.constant 0 : i32
    %c0_i32_0 = arith.constant 0 : i32
    return %arg0, %c0_i32 : i32, i32
  }
  func.func @transform_2(%arg0: i32) -> (i32, i32) {
    %c0_i32 = arith.constant 0 : i32
    %c0_i32_0 = arith.constant 0 : i32
    %c0_i32_1 = arith.constant 0 : i32
    return %c0_i32, %c0_i32_0 : i32, i32
  }
  func.func @transform_3(%arg0: i32) -> (i32, i32) {
    %c0_i32 = arith.constant 0 : i32
    %c0_i32_0 = arith.constant 0 : i32
    %c0_i32_1 = arith.constant 0 : i32
    return %c0_i32, %c0_i32_0 : i32, i32
  }
  func.func @transform_4(%arg0: i32) -> (i32, i32) {
    %c0_i32 = arith.constant 0 : i32
    %c0_i32_0 = arith.constant 0 : i32
    %c0_i32_1 = arith.constant 0 : i32
    return %c0_i32, %c0_i32_0 : i32, i32
  }
  func.func @transform_5(%arg0: i32) -> (i32, i32) {
    %c0_i32 = arith.constant 0 : i32
    %c0_i32_0 = arith.constant 0 : i32
    %c0_i32_1 = arith.constant 0 : i32
    return %c0_i32, %c0_i32_0 : i32, i32
  }
  func.func @transform_6(%arg0: i32) -> (i32, i32) {
    %c0_i32 = arith.constant 0 : i32
    %c0_i32_0 = arith.constant 0 : i32
    %c0_i32_1 = arith.constant 0 : i32
    return %c0_i32, %c0_i32_0 : i32, i32
  }
  func.func @transform_7(%arg0: i32) -> (i32, i32) {
    %c0_i32 = arith.constant 0 : i32
    %c0_i32_0 = arith.constant 0 : i32
    return %arg0, %c0_i32 : i32, i32
  }
}

</mosaic_0001>

<bundles_post_ra>
// kernel: tpu_custom_call.1
= control target key start
LH: loop header
LB: loop body
LE: loop exit
PB: predicated region body
PF: predicated region fallthrough
CT: control target
= control target key end

     0   :  { %12 = vsyncpa [#allocation3], 0  ;;  %s738_s0 = inlined_call_operand.hbm [shape: f32[8,32], index: 0, kind: input, shape index: {}]   ;;  %s739_s1 = inlined_call_operand.hbm [shape: f32[8,32], index: 1, kind: input, shape index: {}]   ;;  %s740_s2 = inlined_call_operand.hbm [shape: f32[32,32], index: 2, kind: input, shape index: {}]   ;;  %s741_s3 = inlined_call_operand.hbm [shape: f32[32,32], index: 3, kind: input, shape index: {}]   ;;  %s742_s4 = inlined_call_operand.vmem [shape: f32[1,32], index: 4, kind: input, shape index: {}]   ;;  %s743_s5 = inlined_call_operand.hbm [shape: f32[32,128], index: 5, kind: input, shape index: {}]   ;;  %s744_s6 = inlined_call_operand.vmem [shape: f32[1,128], index: 6, kind: input, shape index: {}]   ;;  %s745_s7 = inlined_call_operand.hbm [shape: f32[8,128], index: 7, kind: output, shape index: {}]  }
   0x1   :  { %13 = vsyncpa [#allocation6], 0 }
   0x2   :  { %14 = vsyncpa [#allocation9], 0 }
   0x3   :  { %15 = vsyncpa [#allocation4], 0  ;;  %s594_s24 = smov [#allocation5]   ;;  %s454_s28 = scalar_lea.hbm %s739_s1, 128 }
   0x4   :  { %s32_s25 = sshll.u32 %s594_s24, 4  ;;  %p455_p0 = scmp.ne.s32.totalorder %s739_s1, %s454_s28  ;;  %s33_s25 = int_to_ptr.vmem [resolvable:$true] %s32_s25 }
   0x5   :  { %p458_p1 = scmp.lt.u32.totalorder %s454_s28, %s739_s1 }
   0x7   :  { %p460_p2 = pnand %p458_p1, %p455_p0 }
   0x9   :  { %463 = shalt.err (!%p460_p2)
}
   0xa   :  { %s464_s10 = scalar_lea.vmem %s33_s25, 128  ;;  %p469_p4 = scmp.lt.s32.totalorder %s33_s25, %s33_s25 }
   0xb   :  { %p465_p3 = scmp.ne.s32.totalorder %s33_s25, %s464_s10  ;;  %p470_p5 = scmp.lt.s32.totalorder %s464_s10, %s464_s10 }
   0xd   :  { %p471_p6 = por %p470_p5, %p469_p4 }
   0xf   :  { %p472_p7 = pnand %p471_p6, %p465_p3 }
  0x11   :  { %475 = shalt.err (!%p472_p7)
}
  0x12   :  { %35 = dma.hbm_to_vmem [thread:$0]  %s739_s1, 128, %s33_s25, [#allocation6]  }
  0x13   :  { %s595_s13 = smov [#allocation8]   ;;  %s596_s15 = smov [#allocation2]  }
  0x14   :  { %s53_s14 = sshll.u32 %s595_s13, 4  ;;  %s22_s16 = sshll.u32 %s596_s15, 4  ;;  %s54_s14 = int_to_ptr.vmem [resolvable:$true] %s53_s14  ;;  %s23_s16 = int_to_ptr.vmem [resolvable:$true] %s22_s16 }
  0x15   :  { %s476_s19 = scalar_lea.hbm %s741_s3, 512 }
  0x16   :  { %p477_p8 = scmp.ne.s32.totalorder %s741_s3, %s476_s19  ;;  %p480_p9 = scmp.lt.u32.totalorder %s476_s19, %s741_s3 }
  0x18   :  { %p482_p10 = pnand %p480_p9, %p477_p8 }
  0x1a   :  { %485 = shalt.err (!%p482_p10)
}
  0x1b   :  { %s486_s1 = scalar_lea.vmem %s54_s14, 512  ;;  %p491_p12 = scmp.lt.s32.totalorder %s54_s14, %s54_s14 }
  0x1c   :  { %p487_p11 = scmp.ne.s32.totalorder %s54_s14, %s486_s1  ;;  %p492_p13 = scmp.lt.s32.totalorder %s486_s1, %s486_s1 }
  0x1e   :  { %p493_p0 = por %p492_p13, %p491_p12 }
  0x20   :  { %p494_p1 = pnand %p493_p0, %p487_p11 }
  0x22   :  { %497 = shalt.err (!%p494_p1)
}
  0x23   :  { %s597_s24 = smov 128   ;;  %s598_s25 = smov 8  }
  0x24   :  { %59 = dma.hbm_to_vmem [thread:$0]  %s741_s3, 512, %s54_s14, [#allocation9], %s597_s24, %s597_s24, %s598_s25  }
  0x25   :  { %s498_s30 = scalar_lea.hbm %s738_s0, 128 }
  0x26   :  { %p499_p2 = scmp.ne.s32.totalorder %s738_s0, %s498_s30  ;;  %p502_p3 = scmp.lt.u32.totalorder %s498_s30, %s738_s0 }
  0x28   :  { %p504_p4 = pnand %p502_p3, %p499_p2 }
  0x2a   :  { %507 = shalt.err (!%p504_p4)
}
  0x2b   :  { %s508_s12 = scalar_lea.vmem %s23_s16, 128  ;;  %p513_p6 = scmp.lt.s32.totalorder %s23_s16, %s23_s16 }
  0x2c   :  { %p509_p5 = scmp.ne.s32.totalorder %s23_s16, %s508_s12  ;;  %p514_p7 = scmp.lt.s32.totalorder %s508_s12, %s508_s12 }
  0x2e   :  { %p515_p8 = por %p514_p7, %p513_p6 }
  0x30   :  { %p516_p9 = pnand %p515_p8, %p509_p5 }
  0x32   :  { %519 = shalt.err (!%p516_p9)
}
  0x33   :  { %25 = dma.hbm_to_vmem [thread:$0]  %s738_s0, 128, %s23_s16, [#allocation3]  }
  0x34   :  { %s599_s14 = smov [#allocation7]   ;;  %s600_s17 = smov [#allocation10]  }
  0x35   :  { %s41_s15 = sshll.u32 %s599_s14, 4  ;;  %s67_s18 = sshll.u32 %s600_s17, 4  ;;  %s42_s15 = int_to_ptr.vmem [resolvable:$true] %s41_s15  ;;  %s68_s18 = int_to_ptr.vmem [resolvable:$true] %s67_s18 }
  0x36   :  { %s520_s21 = scalar_lea.hbm %s740_s2, 512 }
  0x37   :  { %p521_p10 = scmp.ne.s32.totalorder %s740_s2, %s520_s21  ;;  %p524_p11 = scmp.lt.u32.totalorder %s520_s21, %s740_s2 }
  0x39   :  { %p526_p12 = pnand %p524_p11, %p521_p10 }
  0x3b   :  { %529 = shalt.err (!%p526_p12)
}
  0x3c   :  { %s530_s0 = scalar_lea.vmem %s42_s15, 512  ;;  %p535_p0 = scmp.lt.s32.totalorder %s42_s15, %s42_s15 }
  0x3d   :  { %p531_p13 = scmp.ne.s32.totalorder %s42_s15, %s530_s0  ;;  %p536_p1 = scmp.lt.s32.totalorder %s530_s0, %s530_s0 }
  0x3f   :  { %p537_p2 = por %p536_p1, %p535_p0 }
  0x41   :  { %p538_p3 = pnand %p537_p2, %p531_p13 }
  0x43   :  { %541 = shalt.err (!%p538_p3)
}
  0x44   :  { %47 = dma.hbm_to_vmem [thread:$0]  %s740_s2, 512, %s42_s15, [#allocation6], %s597_s24, %s597_s24, %s598_s25  }
  0x45   :  { %s542_s30 = scalar_lea.hbm %s743_s5, 512 }
  0x46   :  { %p543_p4 = scmp.ne.s32.totalorder %s743_s5, %s542_s30  ;;  %p546_p5 = scmp.lt.u32.totalorder %s542_s30, %s743_s5 }
  0x48   :  { %p548_p6 = pnand %p546_p5, %p543_p4 }
  0x4a   :  { %551 = shalt.err (!%p548_p6)
}
  0x4b   :  { %s552_s12 = scalar_lea.vmem %s68_s18, 512  ;;  %p557_p8 = scmp.lt.s32.totalorder %s68_s18, %s68_s18 }
  0x4c   :  { %p553_p7 = scmp.ne.s32.totalorder %s68_s18, %s552_s12  ;;  %p558_p9 = scmp.lt.s32.totalorder %s552_s12, %s552_s12 }
  0x4e   :  { %p559_p10 = por %p558_p9, %p557_p8 }
  0x50   :  { %p560_p11 = pnand %p559_p10, %p553_p7 }
  0x52   :  { %563 = shalt.err (!%p560_p11)
}
  0x53   :  { %73 = dma.hbm_to_vmem [thread:$0]  %s743_s5, 512, %s68_s18, [#allocation9], %s597_s24, %s597_s24, %s598_s25  }
  0x54   :  { %586 = dma.done.wait [#allocation3], 128  }
  0x55   :  { %587 = vsyncadd [#allocation3], 4294967168 }
  0x56   :  { %588 = dma.done.wait [#allocation6], 640  }
  0x57   :  { %589 = vsyncadd [#allocation6], 4294966656 }
  0x58   :  { %590 = dma.done.wait [#allocation9], 1024  }
  0x59   :  { %591 = vsyncadd [#allocation9], 4294966272  ;;  %v601_v0 = vmov 0.0|0.0   ;;  %vm602_vm0 = vmmov 0   ;;  %v603_v1 = vmov 0.0   ;;  %v97_v2 = vld [vmem:[#allocation8] sm:$0xff] }
  0x5a   :  { %421 = vmatprep.subr.bf16.mxu0 %v601_v0  ;;  %427 = vmatprep.subr.bf16.mxu1 %v601_v0  ;;  %v98_v3 = vld [vmem:[#allocation8 + $0x8] sm:$0xff]  ;;  %v93_v4 = vld [vmem:[#allocation7] sm:$0xff]  ;;  %v99_v7 = vld [vmem:[#allocation8 + $0x10] sm:$0xff]  ;;  %vm101_vm1 = vcmask 261120  }
  0x5b   :  { %396 = vmatprep.mubr.msk.f32.mxu0 %vm602_vm0, %v603_v1  ;;  %407 = vmatprep.mubr.msk.f32.mxu1 %vm602_vm0, %v603_v1  ;;  %v422_v5 = vpack.c.bf16 %v98_v3, %v97_v2  ;;  %v94_v6 = vld [vmem:[#allocation7 + $0x8] sm:$0xff]  ;;  %v100_v8 = vld [vmem:[#allocation8 + $0x18] sm:$0xff]  ;;  %v95_v10 = vld [vmem:[#allocation7 + $0x10] sm:$0xff] }
  0x5c   :  { %v428_v9 = vpack.c.bf16 %v94_v6, %v93_v4  ;;  %v96_v11 = vld [vmem:[#allocation7 + $0x18] sm:$0xff]  ;;  %v425_v12 = vpack.c.bf16 %v100_v8, %v99_v7  ;;  %v91_v15 = vld [vmem:[#allocation2] sm:$0xff]  ;;  %v265_v16 = vld [vmem:[#allocation10] sm:$0xff] }
  0x5d   :  { %423 = vmatpush3.bf16.msra.mxu0 %v422_v5  ;;  %v431_v13 = vpack.c.bf16 %v96_v11, %v95_v10  ;;  %v92_v14 = vld [vmem:[#allocation5] sm:$0xff]  ;;  %v266_v17 = vld [vmem:[#allocation10 + $0x8] sm:$0xff]  ;;  %v267_v18 = vld [vmem:[#allocation10 + $0x10] sm:$0xff] }
  0x5e   :  { %429 = vmatpush3.bf16.msra.mxu1 %v428_v9  ;;  %424 = vmatprep.subr.bf16.mxu0 %v601_v0  ;;  %v434_v19 = vpack.c.bf16 %v266_v17, %v265_v16  ;;  %v268_v20 = vld [vmem:[#allocation10 + $0x18] sm:$0xff]  ;;  %v369_v24 = vld [vmem:[%s742_s4] ss:$0 sm:$0xff]  ;;  %v262_v32 = vsub.f32 %v91_v15, %v92_v14  ;;  %s604_s4 = smov [#allocation11]  }
  0x5f   :  { %430 = vmatprep.subr.bf16.mxu1 %v601_v0  ;;  %v437_v21 = vpack.c.bf16 %v268_v20, %v267_v18  ;;  %v371_v36 = vld [vmem:[%s744_s6] ss:$0 sm:$0xff]  ;;  %s356_s14 = sshll.u32 %s604_s4, 4  ;;  %s357_s14 = int_to_ptr.vmem [resolvable:$true] %s356_s14 }
  0x60   :  { %s564_s15 = scalar_lea.vmem %s357_s14, 128  ;;  %p569_p13 = scmp.lt.s32.totalorder %s357_s14, %s357_s14 }
  0x61   :  { %426 = vmatpush3.bf16.msra.mxu0 %v425_v12  ;;  %p565_p12 = scmp.ne.s32.totalorder %s357_s14, %s564_s15  ;;  %p570_p0 = scmp.lt.s32.totalorder %s564_s15, %s564_s15 }
  0x62   :  { %432 = vmatpush3.bf16.msra.mxu1 %v431_v13  ;;  %433 = vmatprep.subr.bf16.mxu0 %v601_v0 }
  0x63   :  { %p571_p1 = por %p570_p0, %p569_p13 }
  0x64   :  { %397 = vmatmul.mubr.msk.f32.vlgmr.msra.gmra.mrb[0].mxu0 %vm101_vm1, %v92_v14 }
  0x65   :  { %408 = vmatmul.mubr.msk.f32.vlgmr.msra.gmra.mrb[0].mxu1 %vm101_vm1, %v91_v15  ;;  %418 = vmatprep.mubr.msk.f32.mxu0 %vm602_vm0, %v603_v1  ;;  %p572_p2 = pnand %p571_p1, %p565_p12 }
  0x66   :  { %435 = vmatpush3.bf16.msra.mxu0 %v434_v19 }
  0x67   :  { %436 = vmatprep.subr.bf16.mxu0 %v601_v0 }
  0x6a   :  { %438 = vmatpush3.bf16.msra.mxu0 %v437_v21 }
 0x137   :  { %v171_v22 = vpop.f32.mrb[0].mxu0 }
 0x138   :  { %v244_v23 = vpop.f32.mrb[0].mxu1  ;;  %v398_v25 = vpop.f32.mrb[1].mxu0 }
 0x139   :  { %v245_v26 = vadd.f32 %v244_v23, %v171_v22  ;;  %v409_v27 = vpop.f32.mrb[1].mxu1 }
 0x13b   :  { %v255_v28 = vadd.f32 %v369_v24, %v245_v26 }
 0x13d   :  { %v370_v29 = vmul.f32 -1.442695, %v255_v28 }
 0x13f   :  { %450 = vpow2.f32 %v370_v29 }
 0x149   :  { %v451_v30 = vpop.eup %450 }
 0x14a   :  { %v259_v31 = vadd.f32 1.0, %v451_v30 }
 0x14c   :  { %452 = vrcp.f32 %v259_v31 }
 0x156   :  { %v453_v33 = vpop.eup %452 }
 0x157   :  { %v263_v34 = vmul.f32 %v453_v33, %v262_v32 }
 0x159   :  { %v264_v35 = vadd.f32 %v263_v34, %v92_v14 }
 0x15b   :  { %419 = vmatmul.mubr.msk.f32.vlgmr.msra.gmra.mrb[2].mxu0 %vm101_vm1, %v264_v35 }
 0x22e   :  { %v345_v37 = vpop.f32.mrb[2].mxu0 }
 0x22f   :  { %v346_v38 = vadd.f32 %v371_v36, %v345_v37  ;;  %v420_v39 = vpop.f32.mrb[3].mxu0 }
 0x231   :  { %349 = vst [vmem:[#allocation11] sm:$0xff] %v346_v38 }
 0x232   :  { %575 = shalt.err (!%p572_p2)
}
 0x233   :  { %s576_s19 = scalar_lea.hbm %s745_s7, 128 }
 0x234   :  { %p577_p3 = scmp.ne.s32.totalorder %s745_s7, %s576_s19  ;;  %p580_p4 = scmp.lt.u32.totalorder %s576_s19, %s745_s7 }
 0x236   :  { %p582_p5 = pnand %p580_p4, %p577_p3 }
 0x238   :  { %585 = shalt.err (!%p582_p5)
}
 0x239   :  { %359 = dma.vmem_to_hbm [thread:$0]  %s357_s14, 128, %s745_s7, [#allocation4]  }
 0x23a   :  { %592 = dma.done.wait [#allocation4], 128  }
 0x23b   :  { %593 = vsyncadd [#allocation4], 4294967168 }
 0x23c   :  { %363 = vsyncpa [#allocation3], 1 }
 0x23d   :  { %364 = vsyncpa [#allocation6], 1 }
 0x23e   :  { %365 = vsyncpa [#allocation9], 1 }
 0x23f   :  { %366 = vsyncpa [#allocation4], 1 }

// kernel: tpu_custom_call.1
= control target key start
LH: loop header
LB: loop body
LE: loop exit
PB: predicated region body
PF: predicated region fallthrough
CT: control target
= control target key end

     0   :  { %12 = vsyncpa [#allocation3], 0  ;;  %s738_s0 = inlined_call_operand.hbm [shape: f32[8,32], index: 0, kind: input, shape index: {}]   ;;  %s739_s1 = inlined_call_operand.hbm [shape: f32[8,32], index: 1, kind: input, shape index: {}]   ;;  %s740_s2 = inlined_call_operand.hbm [shape: f32[32,32], index: 2, kind: input, shape index: {}]   ;;  %s741_s3 = inlined_call_operand.hbm [shape: f32[32,32], index: 3, kind: input, shape index: {}]   ;;  %s742_s4 = inlined_call_operand.vmem [shape: f32[1,32], index: 4, kind: input, shape index: {}]   ;;  %s743_s5 = inlined_call_operand.hbm [shape: f32[32,128], index: 5, kind: input, shape index: {}]   ;;  %s744_s6 = inlined_call_operand.vmem [shape: f32[1,128], index: 6, kind: input, shape index: {}]   ;;  %s745_s7 = inlined_call_operand.hbm [shape: f32[8,128], index: 7, kind: output, shape index: {}]  }
   0x1   :  { %13 = vsyncpa [#allocation6], 0 }
   0x2   :  { %14 = vsyncpa [#allocation9], 0 }
   0x3   :  { %15 = vsyncpa [#allocation4], 0  ;;  %s594_s24 = smov [#allocation5]   ;;  %s454_s28 = scalar_lea.hbm %s739_s1, 128 }
   0x4   :  { %s32_s25 = sshll.u32 %s594_s24, 4  ;;  %p455_p0 = scmp.ne.s32.totalorder %s739_s1, %s454_s28  ;;  %s33_s25 = int_to_ptr.vmem [resolvable:$true] %s32_s25 }
   0x5   :  { %p458_p1 = scmp.lt.u32.totalorder %s454_s28, %s739_s1 }
   0x7   :  { %p460_p2 = pnand %p458_p1, %p455_p0 }
   0x9   :  { %463 = shalt.err (!%p460_p2)
}
   0xa   :  { %s464_s10 = scalar_lea.vmem %s33_s25, 128  ;;  %p469_p4 = scmp.lt.s32.totalorder %s33_s25, %s33_s25 }
   0xb   :  { %p465_p3 = scmp.ne.s32.totalorder %s33_s25, %s464_s10  ;;  %p470_p5 = scmp.lt.s32.totalorder %s464_s10, %s464_s10 }
   0xd   :  { %p471_p6 = por %p470_p5, %p469_p4 }
   0xf   :  { %p472_p7 = pnand %p471_p6, %p465_p3 }
  0x11   :  { %475 = shalt.err (!%p472_p7)
}
  0x12   :  { %35 = dma.hbm_to_vmem [thread:$0]  %s739_s1, 128, %s33_s25, [#allocation6]  }
  0x13   :  { %s595_s13 = smov [#allocation8]   ;;  %s596_s15 = smov [#allocation2]  }
  0x14   :  { %s53_s14 = sshll.u32 %s595_s13, 4  ;;  %s22_s16 = sshll.u32 %s596_s15, 4  ;;  %s54_s14 = int_to_ptr.vmem [resolvable:$true] %s53_s14  ;;  %s23_s16 = int_to_ptr.vmem [resolvable:$true] %s22_s16 }
  0x15   :  { %s476_s19 = scalar_lea.hbm %s741_s3, 512 }
  0x16   :  { %p477_p8 = scmp.ne.s32.totalorder %s741_s3, %s476_s19  ;;  %p480_p9 = scmp.lt.u32.totalorder %s476_s19, %s741_s3 }
  0x18   :  { %p482_p10 = pnand %p480_p9, %p477_p8 }
  0x1a   :  { %485 = shalt.err (!%p482_p10)
}
  0x1b   :  { %s486_s1 = scalar_lea.vmem %s54_s14, 512  ;;  %p491_p12 = scmp.lt.s32.totalorder %s54_s14, %s54_s14 }
  0x1c   :  { %p487_p11 = scmp.ne.s32.totalorder %s54_s14, %s486_s1  ;;  %p492_p13 = scmp.lt.s32.totalorder %s486_s1, %s486_s1 }
  0x1e   :  { %p493_p0 = por %p492_p13, %p491_p12 }
  0x20   :  { %p494_p1 = pnand %p493_p0, %p487_p11 }
  0x22   :  { %497 = shalt.err (!%p494_p1)
}
  0x23   :  { %s597_s24 = smov 128   ;;  %s598_s25 = smov 8  }
  0x24   :  { %59 = dma.hbm_to_vmem [thread:$0]  %s741_s3, 512, %s54_s14, [#allocation9], %s597_s24, %s597_s24, %s598_s25  }
  0x25   :  { %s498_s30 = scalar_lea.hbm %s738_s0, 128 }
  0x26   :  { %p499_p2 = scmp.ne.s32.totalorder %s738_s0, %s498_s30  ;;  %p502_p3 = scmp.lt.u32.totalorder %s498_s30, %s738_s0 }
  0x28   :  { %p504_p4 = pnand %p502_p3, %p499_p2 }
  0x2a   :  { %507 = shalt.err (!%p504_p4)
}
  0x2b   :  { %s508_s12 = scalar_lea.vmem %s23_s16, 128  ;;  %p513_p6 = scmp.lt.s32.totalorder %s23_s16, %s23_s16 }
  0x2c   :  { %p509_p5 = scmp.ne.s32.totalorder %s23_s16, %s508_s12  ;;  %p514_p7 = scmp.lt.s32.totalorder %s508_s12, %s508_s12 }
  0x2e   :  { %p515_p8 = por %p514_p7, %p513_p6 }
  0x30   :  { %p516_p9 = pnand %p515_p8, %p509_p5 }
  0x32   :  { %519 = shalt.err (!%p516_p9)
}
  0x33   :  { %25 = dma.hbm_to_vmem [thread:$0]  %s738_s0, 128, %s23_s16, [#allocation3]  }
  0x34   :  { %s599_s14 = smov [#allocation7]   ;;  %s600_s17 = smov [#allocation10]  }
  0x35   :  { %s41_s15 = sshll.u32 %s599_s14, 4  ;;  %s67_s18 = sshll.u32 %s600_s17, 4  ;;  %s42_s15 = int_to_ptr.vmem [resolvable:$true] %s41_s15  ;;  %s68_s18 = int_to_ptr.vmem [resolvable:$true] %s67_s18 }
  0x36   :  { %s520_s21 = scalar_lea.hbm %s740_s2, 512 }
  0x37   :  { %p521_p10 = scmp.ne.s32.totalorder %s740_s2, %s520_s21  ;;  %p524_p11 = scmp.lt.u32.totalorder %s520_s21, %s740_s2 }
  0x39   :  { %p526_p12 = pnand %p524_p11, %p521_p10 }
  0x3b   :  { %529 = shalt.err (!%p526_p12)
}
  0x3c   :  { %s530_s0 = scalar_lea.vmem %s42_s15, 512  ;;  %p535_p0 = scmp.lt.s32.totalorder %s42_s15, %s42_s15 }
  0x3d   :  { %p531_p13 = scmp.ne.s32.totalorder %s42_s15, %s530_s0  ;;  %p536_p1 = scmp.lt.s32.totalorder %s530_s0, %s530_s0 }
  0x3f   :  { %p537_p2 = por %p536_p1, %p535_p0 }
  0x41   :  { %p538_p3 = pnand %p537_p2, %p531_p13 }
  0x43   :  { %541 = shalt.err (!%p538_p3)
}
  0x44   :  { %47 = dma.hbm_to_vmem [thread:$0]  %s740_s2, 512, %s42_s15, [#allocation6], %s597_s24, %s597_s24, %s598_s25  }
  0x45   :  { %s542_s30 = scalar_lea.hbm %s743_s5, 512 }
  0x46   :  { %p543_p4 = scmp.ne.s32.totalorder %s743_s5, %s542_s30  ;;  %p546_p5 = scmp.lt.u32.totalorder %s542_s30, %s743_s5 }
  0x48   :  { %p548_p6 = pnand %p546_p5, %p543_p4 }
  0x4a   :  { %551 = shalt.err (!%p548_p6)
}
  0x4b   :  { %s552_s12 = scalar_lea.vmem %s68_s18, 512  ;;  %p557_p8 = scmp.lt.s32.totalorder %s68_s18, %s68_s18 }
  0x4c   :  { %p553_p7 = scmp.ne.s32.totalorder %s68_s18, %s552_s12  ;;  %p558_p9 = scmp.lt.s32.totalorder %s552_s12, %s552_s12 }
  0x4e   :  { %p559_p10 = por %p558_p9, %p557_p8 }
  0x50   :  { %p560_p11 = pnand %p559_p10, %p553_p7 }
  0x52   :  { %563 = shalt.err (!%p560_p11)
}
  0x53   :  { %73 = dma.hbm_to_vmem [thread:$0]  %s743_s5, 512, %s68_s18, [#allocation9], %s597_s24, %s597_s24, %s598_s25  }
  0x54   :  { %586 = dma.done.wait [#allocation3], 128  }
  0x55   :  { %587 = vsyncadd [#allocation3], 4294967168 }
  0x56   :  { %588 = dma.done.wait [#allocation6], 640  }
  0x57   :  { %589 = vsyncadd [#allocation6], 4294966656 }
  0x58   :  { %590 = dma.done.wait [#allocation9], 1024  }
  0x59   :  { %591 = vsyncadd [#allocation9], 4294966272  ;;  %v601_v0 = vmov 0.0|0.0   ;;  %vm602_vm0 = vmmov 0   ;;  %v603_v1 = vmov 0.0   ;;  %v97_v2 = vld [vmem:[#allocation8] sm:$0xff] }
  0x5a   :  { %421 = vmatprep.subr.bf16.mxu0 %v601_v0  ;;  %427 = vmatprep.subr.bf16.mxu1 %v601_v0  ;;  %v98_v3 = vld [vmem:[#allocation8 + $0x8] sm:$0xff]  ;;  %v93_v4 = vld [vmem:[#allocation7] sm:$0xff]  ;;  %v99_v7 = vld [vmem:[#allocation8 + $0x10] sm:$0xff]  ;;  %vm101_vm1 = vcmask 261120  }
  0x5b   :  { %396 = vmatprep.mubr.msk.f32.mxu0 %vm602_vm0, %v603_v1  ;;  %407 = vmatprep.mubr.msk.f32.mxu1 %vm602_vm0, %v603_v1  ;;  %v422_v5 = vpack.c.bf16 %v98_v3, %v97_v2  ;;  %v94_v6 = vld [vmem:[#allocation7 + $0x8] sm:$0xff]  ;;  %v100_v8 = vld [vmem:[#allocation8 + $0x18] sm:$0xff]  ;;  %v95_v10 = vld [vmem:[#allocation7 + $0x10] sm:$0xff] }
  0x5c   :  { %v428_v9 = vpack.c.bf16 %v94_v6, %v93_v4  ;;  %v96_v11 = vld [vmem:[#allocation7 + $0x18] sm:$0xff]  ;;  %v425_v12 = vpack.c.bf16 %v100_v8, %v99_v7  ;;  %v91_v15 = vld [vmem:[#allocation2] sm:$0xff]  ;;  %v265_v16 = vld [vmem:[#allocation10] sm:$0xff] }
  0x5d   :  { %423 = vmatpush3.bf16.msra.mxu0 %v422_v5  ;;  %v431_v13 = vpack.c.bf16 %v96_v11, %v95_v10  ;;  %v92_v14 = vld [vmem:[#allocation5] sm:$0xff]  ;;  %v266_v17 = vld [vmem:[#allocation10 + $0x8] sm:$0xff]  ;;  %v267_v18 = vld [vmem:[#allocation10 + $0x10] sm:$0xff] }
  0x5e   :  { %429 = vmatpush3.bf16.msra.mxu1 %v428_v9  ;;  %424 = vmatprep.subr.bf16.mxu0 %v601_v0  ;;  %v434_v19 = vpack.c.bf16 %v266_v17, %v265_v16  ;;  %v268_v20 = vld [vmem:[#allocation10 + $0x18] sm:$0xff]  ;;  %v369_v24 = vld [vmem:[%s742_s4] ss:$0 sm:$0xff]  ;;  %v262_v32 = vsub.f32 %v91_v15, %v92_v14  ;;  %s604_s4 = smov [#allocation11]  }
  0x5f   :  { %430 = vmatprep.subr.bf16.mxu1 %v601_v0  ;;  %v437_v21 = vpack.c.bf16 %v268_v20, %v267_v18  ;;  %v371_v36 = vld [vmem:[%s744_s6] ss:$0 sm:$0xff]  ;;  %s356_s14 = sshll.u32 %s604_s4, 4  ;;  %s357_s14 = int_to_ptr.vmem [resolvable:$true] %s356_s14 }
  0x60   :  { %s564_s15 = scalar_lea.vmem %s357_s14, 128  ;;  %p569_p13 = scmp.lt.s32.totalorder %s357_s14, %s357_s14 }
  0x61   :  { %426 = vmatpush3.bf16.msra.mxu0 %v425_v12  ;;  %p565_p12 = scmp.ne.s32.totalorder %s357_s14, %s564_s15  ;;  %p570_p0 = scmp.lt.s32.totalorder %s564_s15, %s564_s15 }
  0x62   :  { %432 = vmatpush3.bf16.msra.mxu1 %v431_v13  ;;  %433 = vmatprep.subr.bf16.mxu0 %v601_v0 }
  0x63   :  { %p571_p1 = por %p570_p0, %p569_p13 }
  0x64   :  { %397 = vmatmul.mubr.msk.f32.vlgmr.msra.gmra.mrb[0].mxu0 %vm101_vm1, %v92_v14 }
  0x65   :  { %408 = vmatmul.mubr.msk.f32.vlgmr.msra.gmra.mrb[0].mxu1 %vm101_vm1, %v91_v15  ;;  %418 = vmatprep.mubr.msk.f32.mxu0 %vm602_vm0, %v603_v1  ;;  %p572_p2 = pnand %p571_p1, %p565_p12 }
  0x66   :  { %435 = vmatpush3.bf16.msra.mxu0 %v434_v19 }
  0x67   :  { %436 = vmatprep.subr.bf16.mxu0 %v601_v0 }
  0x6a   :  { %438 = vmatpush3.bf16.msra.mxu0 %v437_v21 }
 0x137   :  { %v171_v22 = vpop.f32.mrb[0].mxu0 }
 0x138   :  { %v244_v23 = vpop.f32.mrb[0].mxu1  ;;  %v398_v25 = vpop.f32.mrb[1].mxu0 }
 0x139   :  { %v245_v26 = vadd.f32 %v244_v23, %v171_v22  ;;  %v409_v27 = vpop.f32.mrb[1].mxu1 }
 0x13b   :  { %v255_v28 = vadd.f32 %v369_v24, %v245_v26 }
 0x13d   :  { %v370_v29 = vmul.f32 -1.442695, %v255_v28 }
 0x13f   :  { %450 = vpow2.f32 %v370_v29 }
 0x149   :  { %v451_v30 = vpop.eup %450 }
 0x14a   :  { %v259_v31 = vadd.f32 1.0, %v451_v30 }
 0x14c   :  { %452 = vrcp.f32 %v259_v31 }
 0x156   :  { %v453_v33 = vpop.eup %452 }
 0x157   :  { %v263_v34 = vmul.f32 %v453_v33, %v262_v32 }
 0x159   :  { %v264_v35 = vadd.f32 %v263_v34, %v92_v14 }
 0x15b   :  { %419 = vmatmul.mubr.msk.f32.vlgmr.msra.gmra.mrb[2].mxu0 %vm101_vm1, %v264_v35 }
 0x22e   :  { %v345_v37 = vpop.f32.mrb[2].mxu0 }
 0x22f   :  { %v346_v38 = vadd.f32 %v371_v36, %v345_v37  ;;  %v420_v39 = vpop.f32.mrb[3].mxu0 }
 0x231   :  { %349 = vst [vmem:[#allocation11] sm:$0xff] %v346_v38 }
 0x232   :  { %575 = shalt.err (!%p572_p2)
}
 0x233   :  { %s576_s19 = scalar_lea.hbm %s745_s7, 128 }
 0x234   :  { %p577_p3 = scmp.ne.s32.totalorder %s745_s7, %s576_s19  ;;  %p580_p4 = scmp.lt.u32.totalorder %s576_s19, %s745_s7 }
 0x236   :  { %p582_p5 = pnand %p580_p4, %p577_p3 }
 0x238   :  { %585 = shalt.err (!%p582_p5)
}
 0x239   :  { %359 = dma.vmem_to_hbm [thread:$0]  %s357_s14, 128, %s745_s7, [#allocation4]  }
 0x23a   :  { %592 = dma.done.wait [#allocation4], 128  }
 0x23b   :  { %593 = vsyncadd [#allocation4], 4294967168 }
 0x23c   :  { %363 = vsyncpa [#allocation3], 1 }
 0x23d   :  { %364 = vsyncpa [#allocation6], 1 }
 0x23e   :  { %365 = vsyncpa [#allocation9], 1 }
 0x23f   :  { %366 = vsyncpa [#allocation4], 1 }

</bundles_post_ra>
